<compile_context>
chip_gen: v7x
topology: tpu7x:2x2x1
jax: 0.10.0
libtpu: 0.0.40
codegen_flags: <defaults>
</compile_context>

<pallas_src>
import functools

import jax
import jax.numpy as jnp
from jax.experimental import pallas as pl
from jax.experimental.pallas import tpu as pltpu


def _round_up(x: int, m: int) -> int:
    return ((x + m - 1) // m) * m


def _pick_tile(total: int, max_tile: int, granule: int = 128) -> int:
    """Largest multiple of `granule` that divides `total` and is <= max_tile."""
    best = granule
    t = granule
    limit = min(total, max_tile)
    while t <= limit:
        if total % t == 0:
            best = t
        t += granule
    return best


def _linear_kernel(x_ref, w_ref, b_ref, o_ref, *, tk, x_resident):
    # x_ref: (tm, INp) if x_resident else (tm, tk)   [compute dtype]
    # w_ref: (tk, tn)                                [compute dtype]
    # b_ref: (1, tn)   f32
    # o_ref: (tm, tn)  f32  — doubles as the K-axis accumulator (index_map
    #                         ignores k, so it stays resident across K steps)
    k = pl.program_id(2)

    @pl.when(k == 0)
    def _():
        o_ref[...] = jnp.zeros_like(o_ref)

    if x_resident:
        start = pl.multiple_of(k * tk, tk)
        x_tile = x_ref[:, pl.ds(start, tk)]
    else:
        x_tile = x_ref[...]

    # RHS is already [IN, OUT] (transposed once at init) -> plain MXU feed.
    o_ref[...] += jnp.dot(x_tile, w_ref[...],
                          preferred_element_type=jnp.float32)

    @pl.when(k == pl.num_programs(2) - 1)
    def _():
        o_ref[...] += b_ref[...]


def _forward_impl(x, w_t, b2d, *, out_features, compute_dtype,
                  tm_max=512, tn_max=512, tk_max=1024,
                  x_resident_budget=4 * 1024 * 1024):
    """y = x @ W^T + b with pre-padded/transposed params w_t:[INp,OUTp], b2d:[1,OUTp]."""
    B, IN = x.shape
    INp, OUTp = w_t.shape
    assert IN <= INp, "in_features mismatch"
    itemsize = jnp.dtype(compute_dtype).itemsize
    sub = 16 if itemsize == 2 else 8          # bf16 packs 2 rows per sublane

    # ---- tile sizes (all static at trace time) ----
    Bp = _round_up(B, sub)
    tm = min(Bp, tm_max)
    Bp = _round_up(Bp, tm)

    tn = _pick_tile(OUTp, tn_max)
    tk = _pick_tile(INp, tk_max)

    # Give both TensorCores (v7x) work if the M/N grid would be a single tile.
    if Bp // tm == 1 and OUTp // tn == 1 and OUTp > 128 and (OUTp // 2) % 128 == 0:
        tn = OUTp // 2

    # Hold x resident across the whole K axis when it fits the budget.
    x_resident = (tm * INp * itemsize) <= x_resident_budget

    # ---- per-call x prep: cast to compute dtype, pad B and IN ----
    xp = x.astype(compute_dtype)
    if Bp != B or INp != IN:
        xp = jnp.pad(xp, ((0, Bp - B), (0, INp - IN)))

    grid = (Bp // tm, OUTp // tn, INp // tk)

    if x_resident:
        x_spec = pl.BlockSpec((tm, INp), lambda i, j, k: (i, 0))
        x_bytes = tm * INp * itemsize
    else:
        x_spec = pl.BlockSpec((tm, tk), lambda i, j, k: (i, k))
        x_bytes = tm * tk * itemsize

    # VMEM budget: double-buffered inputs + resident f32 output tile, with
    # headroom, capped at 48 MiB so it is always safe on v7x's 64 MiB VMEM.
    working = 2 * (x_bytes + tk * tn * itemsize + tn * 4) + 2 * (tm * tn * 4)
    vmem_limit = int(min(48 * 1024 * 1024, max(32 * 1024 * 1024, working * 2)))

    out_padded = pl.pallas_call(
        functools.partial(_linear_kernel, tk=tk, x_resident=x_resident),
        out_shape=jax.ShapeDtypeStruct((Bp, OUTp), jnp.float32),
        grid=grid,
        in_specs=[
            x_spec,
            # pre-transposed weight [INp, OUTp]: varies with (K, N)
            pl.BlockSpec((tk, tn), lambda i, j, k: (k, j)),
            # bias: varies only with N
            pl.BlockSpec((1, tn), lambda i, j, k: (0, j)),
        ],
        out_specs=pl.BlockSpec((tm, tn), lambda i, j, k: (i, j)),
        compiler_params=pltpu.CompilerParams(
            dimension_semantics=("parallel", "parallel", "arbitrary"),
            vmem_limit_bytes=vmem_limit,
        ),
    )(xp, w_t, b2d)

    return out_padded[:B, :out_features].astype(x.dtype)


class LinearRegressionPallas:
    """Pallas TPU equivalent of the PyTorch LinearRegression module."""

    def __init__(self, weight, bias, *, compute_dtype=jnp.bfloat16):
        OUT, IN = weight.shape
        assert bias.shape == (OUT,)
        INp = _round_up(IN, 128)
        OUTp = _round_up(OUT, 128)

        # One-time parameter prep (amortized across forward calls):
        #   pad to lane granules, transpose to [INp, OUTp] so the kernel RHS
        #   tile is MXU-native, cast to the compute dtype (bf16 by default).
        w_padded = jnp.pad(weight, ((0, OUTp - OUT), (0, INp - IN)))
        self.w_t = jnp.asarray(w_padded.T, dtype=compute_dtype)      # [INp, OUTp]
        self.b2d = jnp.pad(bias, (0, OUTp - OUT)).reshape(1, OUTp).astype(jnp.float32)
        self.out_features = OUT
        self.in_features = IN
        self.compute_dtype = compute_dtype

        self._fwd = jax.jit(functools.partial(
            _forward_impl, out_features=OUT, compute_dtype=compute_dtype))

    def __call__(self, x):
        assert x.shape[-1] == self.in_features
        return self._fwd(x, self.w_t, self.b2d)


if __name__ == "__main__":
    key = jax.random.PRNGKey(0)
    k_x, k_w, k_b = jax.random.split(key, 3)

    batch, in_features, out_features = 8, 32, 16

    x = jax.random.normal(k_x, (batch, in_features), dtype=jnp.float32)
    # Deterministic init mimicking nn.Linear's uniform(-1/sqrt(in), 1/sqrt(in))
    bound = 1.0 / (in_features ** 0.5)
    weight = jax.random.uniform(
        k_w, (out_features, in_features), dtype=jnp.float32,
        minval=-bound, maxval=bound)
    bias = jax.random.uniform(
        k_b, (out_features,), dtype=jnp.float32, minval=-bound, maxval=bound)

    y_ref = x @ weight.T + bias

    # f32 compute path: exact check against the reference.
    model_f32 = LinearRegressionPallas(weight, bias, compute_dtype=jnp.float32)
    y_f32 = jax.block_until_ready(model_f32(x))
    assert y_f32.shape == y_ref.shape, "shape mismatch vs reference (f32 path)"
    assert jnp.allclose(y_f32, y_ref, atol=1e-5, rtol=1e-5), "mismatch (f32 path)"

    # bf16 compute path (default, MXU-rated dtype): relaxed tolerance.
    model_bf16 = LinearRegressionPallas(weight, bias)
    y_bf16 = jax.block_until_ready(model_bf16(x))
    assert y_bf16.shape == y_ref.shape, "shape mismatch vs reference (bf16 path)"
    assert jnp.allclose(y_bf16, y_ref, atol=5e-2, rtol=5e-2), "mismatch (bf16 path)"

    print("KERNEL_OK")
</pallas_src>

<mosaic_0001>
module attributes {stable_mosaic.version = 11 : i64} {
  func.func @_linear_kernel(%arg0: i32, %arg1: i32, %arg2: i32, %arg3: memref<8x128xf32, #tpu.memory_space<vmem>>, %arg4: memref<128x128xf32, #tpu.memory_space<vmem>>, %arg5: memref<1x128xf32, #tpu.memory_space<vmem>>, %arg6: memref<8x128xf32, #tpu.memory_space<vmem>>) attributes {dimension_semantics = [#tpu.dimension_semantics<parallel>, #tpu.dimension_semantics<parallel>, #tpu.dimension_semantics<arbitrary>], iteration_bounds = array<i64: 1, 1, 1>, scalar_prefetch = 0 : i64, scratch_operands = 0 : i64, tpu.core_type = #tpu.core_type<tc>, window_params = [{transform_indices = @transform_0, window_bounds = array<i64: 8, 128>}, {transform_indices = @transform_1, window_bounds = array<i64: 128, 128>}, {transform_indices = @transform_2, window_bounds = array<i64: 1, 128>}, {transform_indices = @transform_3, window_bounds = array<i64: 8, 128>}]} {
    %c0_i32 = arith.constant 0 : i32
    %0 = arith.cmpi eq, %arg2, %c0_i32 : i32
    %1 = arith.extui %0 : i1 to i32
    %c0_i32_0 = arith.constant 0 : i32
    %2 = arith.cmpi ne, %1, %c0_i32_0 : i32
    scf.if %2 {
      %cst_9 = arith.constant 0.000000e+00 : f32
      %15 = vector.broadcast %cst_9 : f32 to vector<8x128xf32>
      %c0_10 = arith.constant 0 : index
      %c0_11 = arith.constant 0 : index
      %16 = vector.load %arg6[%c0_10, %c0_11] : memref<8x128xf32, #tpu.memory_space<vmem>>, vector<8x128xf32>
      tpu.vector_store %arg6[%c0_10, %c0_11], %15 {strides = array<i32>} : memref<8x128xf32, #tpu.memory_space<vmem>>, vector<8x128xf32>,
    } else {
    }
    %c128_i32 = arith.constant 128 : i32
    %3 = arith.muli %arg2, %c128_i32 : i32
    %4 = tpu.assume_multiple %3, 128 : i32
    %c0 = arith.constant 0 : index
    %5 = arith.index_cast %4 : i32 to index
    %6 = vector.load %arg3[%c0, %5] : memref<8x128xf32, #tpu.memory_space<vmem>>, vector<8x128xf32>
    %c0_1 = arith.constant 0 : index
    %c0_2 = arith.constant 0 : index
    %7 = vector.load %arg6[%c0_1, %c0_2] : memref<8x128xf32, #tpu.memory_space<vmem>>, vector<8x128xf32>
    %c0_3 = arith.constant 0 : index
    %c0_4 = arith.constant 0 : index
    %8 = vector.load %arg4[%c0_3, %c0_4] : memref<128x128xf32, #tpu.memory_space<vmem>>, vector<128x128xf32>
    %cst = arith.constant dense<0.000000e+00> : vector<8x128xf32>
    %9 = tpu.matmul %6, %8, %cst {dimension_numbers = #tpu.dot_dimension_numbers<[1], [0], [0], [1], [0, 0, 1, 1], [], []>} : vector<8x128xf32>, vector<128x128xf32>, vector<8x128xf32> -> vector<8x128xf32>
    %10 = arith.addf %7, %9 : vector<8x128xf32>
    %c0_5 = arith.constant 0 : index
    %c0_6 = arith.constant 0 : index
    %11 = vector.load %arg6[%c0_5, %c0_6] : memref<8x128xf32, #tpu.memory_space<vmem>>, vector<8x128xf32>
    tpu.vector_store %arg6[%c0_5, %c0_6], %10 {strides = array<i32>} : memref<8x128xf32, #tpu.memory_space<vmem>>, vector<8x128xf32>,
    %c0_i32_7 = arith.constant 0 : i32
    %12 = arith.cmpi eq, %arg2, %c0_i32_7 : i32
    %13 = arith.extui %12 : i1 to i32
    %c0_i32_8 = arith.constant 0 : i32
    %14 = arith.cmpi ne, %13, %c0_i32_8 : i32
    scf.if %14 {
      %c0_9 = arith.constant 0 : index
      %c0_10 = arith.constant 0 : index
      %15 = vector.load %arg6[%c0_9, %c0_10] : memref<8x128xf32, #tpu.memory_space<vmem>>, vector<8x128xf32>
      %c0_11 = arith.constant 0 : index
      %c0_12 = arith.constant 0 : index
      %16 = vector.load %arg5[%c0_11, %c0_12] : memref<1x128xf32, #tpu.memory_space<vmem>>, vector<1x128xf32>
      %17 = vector.broadcast %16 : vector<1x128xf32> to vector<8x128xf32>
      %18 = arith.addf %15, %17 : vector<8x128xf32>
      %c0_13 = arith.constant 0 : index
      %c0_14 = arith.constant 0 : index
      %19 = vector.load %arg6[%c0_13, %c0_14] : memref<8x128xf32, #tpu.memory_space<vmem>>, vector<8x128xf32>
      tpu.vector_store %arg6[%c0_13, %c0_14], %18 {strides = array<i32>} : memref<8x128xf32, #tpu.memory_space<vmem>>, vector<8x128xf32>,
    } else {
    }
    return
  }
  func.func @transform_0(%arg0: i32, %arg1: i32, %arg2: i32) -> (i32, i32) {
    %c0_i32 = arith.constant 0 : i32
    %c0_i32_0 = arith.constant 0 : i32
    return %arg0, %c0_i32 : i32, i32
  }
  func.func @transform_1(%arg0: i32, %arg1: i32, %arg2: i32) -> (i32, i32) {
    %c0_i32 = arith.constant 0 : i32
    return %arg2, %arg1 : i32, i32
  }
  func.func @transform_2(%arg0: i32, %arg1: i32, %arg2: i32) -> (i32, i32) {
    %c0_i32 = arith.constant 0 : i32
    %c0_i32_0 = arith.constant 0 : i32
    return %c0_i32, %arg1 : i32, i32
  }
  func.func @transform_3(%arg0: i32, %arg1: i32, %arg2: i32) -> (i32, i32) {
    %c0_i32 = arith.constant 0 : i32
    return %arg0, %arg1 : i32, i32
  }
}

</mosaic_0001>

<bundles_post_ra>
// kernel: _forward_impl.1
= control target key start
LH: loop header
LB: loop body
LE: loop exit
PB: predicated region body
PF: predicated region fallthrough
CT: control target
= control target key end

     0   :  { %8 = vsyncpa [#allocation3], 0  ;;  %s346_s0 = inlined_call_operand.vmem [shape: f32[8,128], index: 0, kind: input, shape index: {}]   ;;  %s347_s1 = inlined_call_operand.hbm [shape: f32[128,128], index: 1, kind: input, shape index: {}]   ;;  %s348_s2 = inlined_call_operand.vmem [shape: f32[1,128], index: 2, kind: input, shape index: {}]   ;;  %s349_s3 = inlined_call_operand.hbm [shape: f32[8,128], index: 3, kind: output, shape index: {}]  }
   0x1   :  { %9 = vsyncpa [#allocation4], 0  ;;  %s289_s12 = smov [#allocation2]   ;;  %s241_s16 = scalar_lea.hbm %s347_s1, 2048 }
   0x2   :  { %s17_s13 = sshll.u32 %s289_s12, 4  ;;  %p242_p0 = scmp.ne.s32.totalorder %s347_s1, %s241_s16  ;;  %s18_s13 = int_to_ptr.vmem [resolvable:$true] %s17_s13 }
   0x3   :  { %p245_p1 = scmp.lt.u32.totalorder %s241_s16, %s347_s1 }
   0x5   :  { %p247_p2 = pnand %p245_p1, %p242_p0 }
   0x7   :  { %250 = shalt.err (!%p247_p2)
}
   0x8   :  { %s251_s21 = scalar_lea.vmem %s18_s13, 2048  ;;  %p256_p4 = scmp.lt.s32.totalorder %s18_s13, %s18_s13 }
   0x9   :  { %p252_p3 = scmp.ne.s32.totalorder %s18_s13, %s251_s21  ;;  %p257_p5 = scmp.lt.s32.totalorder %s251_s21, %s251_s21 }
   0xb   :  { %p258_p6 = por %p257_p5, %p256_p4 }
   0xd   :  { %p259_p7 = pnand %p258_p6, %p252_p3 }
   0xf   :  { %262 = shalt.err (!%p259_p7)
}
  0x10   :  { %s290_s22 = smov 128   ;;  %s291_s23 = smov 8  }
  0x11   :  { %23 = dma.hbm_to_vmem [thread:$0]  %s347_s1, 2048, %s18_s13, [#allocation3], %s290_s22, %s290_s22, %s291_s23  }
  0x12   :  { %285 = dma.done.wait [#allocation3], 2048  }
  0x13   :  { %286 = vsyncadd [#allocation3], 4294965248  ;;  %v292_v0 = vmov 0.0|0.0   ;;  %vm293_vm0 = vmmov 0   ;;  %v294_v1 = vmov 0.0   ;;  %v40_v2 = vld [vmem:[#allocation2] sm:$0xff] }
  0x14   :  { %210 = vmatprep.subr.bf16.mxu0 %v292_v0  ;;  %207 = vmatprep.mubr.msk.f32.mxu0 %vm293_vm0, %v294_v1  ;;  %v41_v3 = vld [vmem:[#allocation2 + $0x8] sm:$0xff]  ;;  %v42_v4 = vld [vmem:[#allocation2 + $0x10] sm:$0xff]  ;;  %v43_v6 = vld [vmem:[#allocation2 + $0x18] sm:$0xff]  ;;  %s295_s29 = smov [#allocation5]  }
  0x15   :  { %v211_v5 = vpack.c.bf16 %v41_v3, %v40_v2  ;;  %v214_v7 = vpack.c.bf16 %v43_v6, %v42_v4  ;;  %v44_v8 = vld [vmem:[#allocation2 + $0x20] sm:$0xff]  ;;  %v45_v9 = vld [vmem:[#allocation2 + $0x28] sm:$0xff]  ;;  %v46_v11 = vld [vmem:[#allocation2 + $0x30] sm:$0xff]  ;;  %s147_s30 = sshll.u32 %s295_s29, 4  ;;  %s148_s30 = int_to_ptr.vmem [resolvable:$true] %s147_s30 }
  0x16   :  { %v217_v10 = vpack.c.bf16 %v45_v9, %v44_v8  ;;  %v47_v12 = vld [vmem:[#allocation2 + $0x38] sm:$0xff]  ;;  %v48_v14 = vld [vmem:[#allocation2 + $0x40] sm:$0xff]  ;;  %v49_v15 = vld [vmem:[#allocation2 + $0x48] sm:$0xff]  ;;  %s263_s4 = scalar_lea.vmem %s148_s30, 128  ;;  %p268_p9 = scmp.lt.s32.totalorder %s148_s30, %s148_s30 }
  0x17   :  { %212 = vmatpush3.bf16.msra.mxu0 %v211_v5  ;;  %v220_v13 = vpack.c.bf16 %v47_v12, %v46_v11  ;;  %v223_v16 = vpack.c.bf16 %v49_v15, %v48_v14  ;;  %v50_v17 = vld [vmem:[#allocation2 + $0x50] sm:$0xff]  ;;  %v51_v18 = vld [vmem:[#allocation2 + $0x58] sm:$0xff]  ;;  %v52_v20 = vld [vmem:[#allocation2 + $0x60] sm:$0xff]  ;;  %p264_p8 = scmp.ne.s32.totalorder %s148_s30, %s263_s4  ;;  %p269_p10 = scmp.lt.s32.totalorder %s263_s4, %s263_s4 }
  0x18   :  { %213 = vmatprep.subr.bf16.mxu0 %v292_v0  ;;  %v226_v19 = vpack.c.bf16 %v51_v18, %v50_v17  ;;  %v53_v21 = vld [vmem:[#allocation2 + $0x68] sm:$0xff]  ;;  %v54_v23 = vld [vmem:[#allocation2 + $0x70] sm:$0xff]  ;;  %v55_v24 = vld [vmem:[#allocation2 + $0x78] sm:$0xff] }
  0x19   :  { %v229_v22 = vpack.c.bf16 %v53_v21, %v52_v20  ;;  %v232_v25 = vpack.c.bf16 %v55_v24, %v54_v23  ;;  %v38_v26 = vld [vmem:[%s346_s0] sm:$0xff]  ;;  %p270_p11 = por %p269_p10, %p268_p9 }
  0x1a   :  { %v157_v28 = vld [vmem:[%s348_s2] ss:$0 sm:$0xff] }
  0x1b   :  { %215 = vmatpush3.bf16.msra.mxu0 %v214_v7  ;;  %p271_p12 = pnand %p270_p11, %p264_p8 }
  0x1c   :  { %216 = vmatprep.subr.bf16.mxu0 %v292_v0 }
  0x1f   :  { %218 = vmatpush3.bf16.msra.mxu0 %v217_v10 }
  0x20   :  { %219 = vmatprep.subr.bf16.mxu0 %v292_v0 }
  0x23   :  { %221 = vmatpush3.bf16.msra.mxu0 %v220_v13 }
  0x24   :  { %222 = vmatprep.subr.bf16.mxu0 %v292_v0 }
  0x27   :  { %224 = vmatpush3.bf16.msra.mxu0 %v223_v16 }
  0x28   :  { %225 = vmatprep.subr.bf16.mxu0 %v292_v0 }
  0x2b   :  { %227 = vmatpush3.bf16.msra.mxu0 %v226_v19 }
  0x2c   :  { %228 = vmatprep.subr.bf16.mxu0 %v292_v0 }
  0x2f   :  { %230 = vmatpush3.bf16.msra.mxu0 %v229_v22 }
  0x30   :  { %231 = vmatprep.subr.bf16.mxu0 %v292_v0 }
  0x33   :  { %233 = vmatpush3.bf16.msra.mxu0 %v232_v25 }
  0x36   :  { %208 = vmatmul.mubr.f32.vlgmr.msra.gmra.mrb[0].mxu0 %v38_v26 }
 0x109   :  { %v122_v27 = vpop.f32.mrb[0].mxu0 }
 0x10a   :  { %v209_v29 = vpop.f32.mrb[1].mxu0  ;;  %v139_v30 = vadd.f32 %v157_v28, %v122_v27 }
 0x10c   :  { %140 = vst [vmem:[#allocation5] sm:$0xff] %v139_v30 }
 0x10d   :  { %274 = shalt.err (!%p271_p12)
}
 0x10e   :  { %s275_s6 = scalar_lea.hbm %s349_s3, 128 }
 0x10f   :  { %p276_p13 = scmp.ne.s32.totalorder %s349_s3, %s275_s6  ;;  %p279_p0 = scmp.lt.u32.totalorder %s275_s6, %s349_s3 }
 0x111   :  { %p281_p1 = pnand %p279_p0, %p276_p13 }
 0x113   :  { %284 = shalt.err (!%p281_p1)
}
 0x114   :  { %150 = dma.vmem_to_hbm [thread:$0]  %s148_s30, 128, %s349_s3, [#allocation4]  }
 0x115   :  { %287 = dma.done.wait [#allocation4], 128  }
 0x116   :  { %288 = vsyncadd [#allocation4], 4294967168 }
 0x117   :  { %154 = vsyncpa [#allocation3], 1 }
 0x118   :  { %155 = vsyncpa [#allocation4], 1 }

</bundles_post_ra>
